<compile_context>
chip_gen: v5e
topology: v5e:2x2
jax: 0.10.0
libtpu: 0.0.40
codegen_flags: <defaults>
</compile_context>

<pallas_src>
import functools

import jax
import jax.numpy as jnp
from jax.experimental import pallas as pl
from jax.experimental.pallas import tpu as pltpu


def _round_up(x: int, m: int) -> int:
    return (x + m - 1) // m * m


def _softmax_lastdim(z):
    # Exact softmax: numerically-stable exp, exact divide. (The approx EUP
    # reciprocal was dropped — it broke the sum-to-one property beyond 2e-3.)
    m = jnp.max(z, axis=-1, keepdims=True)
    e = jnp.exp(z - m)
    return e / jnp.sum(e, axis=-1, keepdims=True)


def gumbel_softmax_kernel(x_ref, w_ref, b_ref, u_ref, out_ref, *,
                          inv_temperature: float, eps: float, c_dim: int):
    # Linear: logits = x @ W + b   (single small MXU matmul per batch tile;
    # K is not tiled — the kernel is memory-bound, not MXU-bound).
    logits = (
        jnp.dot(x_ref[...], w_ref[...], preferred_element_type=jnp.float32)
        + b_ref[...]
    )

    # prob = softmax(logits, dim=-1)
    prob = _softmax_lastdim(logits)

    # Gumbel noise: g = -log(-log(U + eps) + eps)
    g = -jnp.log(-jnp.log(u_ref[...] + eps) + eps)

    # y = softmax((logits + g) / temperature, dim=-1)   (multiply by 1/T)
    y = _softmax_lastdim((logits + g) * inv_temperature)

    # Lane-dense combined output slab: [logits | prob | y | zero padding].
    out_ref[...] = jnp.zeros_like(out_ref)
    out_ref[:, 0:c_dim] = logits
    out_ref[:, c_dim:2 * c_dim] = prob
    out_ref[:, 2 * c_dim:3 * c_dim] = y


def gumbel_softmax_forward(x, w, b, u, temperature=1.0, hard=False, eps=1e-20):
    """Forward pass of GumbelSoftmax.

    Args:
      x: (B, f_dim) float32 inputs.
      w: (f_dim, c_dim) float32 linear weight (transposed vs. PyTorch).
      b: (c_dim,) float32 linear bias.
      u: (B, c_dim) float32 uniform(0,1) noise for the Gumbel sample.
      temperature: softmax temperature (static python float).
      hard: if True, straight-through hard one-hot sample.

    Returns:
      (logits, prob, y) each of shape (B, c_dim), float32.
    """
    B, f_dim = x.shape
    c_dim = w.shape[1]
    lanes = _round_up(3 * c_dim, 128)   # lane-dense packed output width

    # Batch tile: large when B allows (better amortizes per-step overhead),
    # multiple of 8 sublanes.
    block_b = min(512, _round_up(B, 8))
    B_pad = _round_up(B, block_b)
    if B_pad != B:
        x = jnp.pad(x, ((0, B_pad - B), (0, 0)))
        u = jnp.pad(u, ((0, B_pad - B), (0, 0)), constant_values=0.5)

    b2d = b.reshape(1, c_dim)

    kernel = functools.partial(
        gumbel_softmax_kernel,
        inv_temperature=1.0 / float(temperature),
        eps=float(eps),
        c_dim=c_dim,
    )

    slab = pl.pallas_call(
        kernel,
        out_shape=jax.ShapeDtypeStruct((B_pad, lanes), jnp.float32),
        grid=(B_pad // block_b,),
        in_specs=[
            pl.BlockSpec((block_b, f_dim), lambda i: (i, 0)),   # x: tiled over B
            pl.BlockSpec((f_dim, c_dim), lambda i: (0, 0)),     # W: VMEM-resident
            pl.BlockSpec((1, c_dim), lambda i: (0, 0)),         # b: VMEM-resident
            pl.BlockSpec((block_b, c_dim), lambda i: (i, 0)),   # u: tiled over B
        ],
        out_specs=pl.BlockSpec((block_b, lanes), lambda i: (i, 0)),
        compiler_params=pltpu.CompilerParams(
            dimension_semantics=("parallel",),      # megacore split on v7x
            vmem_limit_bytes=32 * 1024 * 1024,      # raise v5e's 16 MiB default
        ),
    )(x, w, b2d, u)

    logits = slab[:B, 0:c_dim]
    prob = slab[:B, c_dim:2 * c_dim]
    y = slab[:B, 2 * c_dim:3 * c_dim]

    if hard:
        # Straight-through estimator: forward value is the hard one-hot,
        # gradients flow through the soft sample.
        ind = jnp.argmax(y, axis=-1)
        y_hard = jax.nn.one_hot(ind, c_dim, dtype=y.dtype)
        y = y + jax.lax.stop_gradient(y_hard - y)
    # TODO(synk): if downstream only needs (prob, y), drop logits from the slab
    # to cut ~1/3 of the output HBM traffic.

    return logits, prob, y


if __name__ == "__main__":
    B, f_dim, c_dim = 8, 32, 8

    key = jax.random.PRNGKey(0)
    kx, kw, kb, ku = jax.random.split(key, 4)

    x = jax.random.normal(kx, (B, f_dim), dtype=jnp.float32)
    # Deterministic Linear params (mimicking nn.Linear's uniform init range).
    bound = 1.0 / (f_dim ** 0.5)
    w = jax.random.uniform(kw, (f_dim, c_dim), jnp.float32, -bound, bound)
    b = jax.random.uniform(kb, (c_dim,), jnp.float32, -bound, bound)
    # Uniform noise for Gumbel sampling (equivalent of torch.rand in sample_gumbel).
    u = jax.random.uniform(ku, (B, c_dim), jnp.float32)

    logits, prob, y = gumbel_softmax_forward(x, w, b, u, temperature=1.0, hard=False)
    jax.block_until_ready((logits, prob, y))

    # Sanity checks against a pure-JAX reference.
    ref_logits = x @ w + b
    ref_prob = jax.nn.softmax(ref_logits, axis=-1)
    g = -jnp.log(-jnp.log(u + 1e-20) + 1e-20)
    ref_y = jax.nn.softmax((ref_logits + g) / 1.0, axis=-1)
    assert logits.shape == (B, c_dim) and prob.shape == (B, c_dim) and y.shape == (B, c_dim)
    assert jnp.allclose(logits, ref_logits, atol=2e-3, rtol=2e-3)
    assert jnp.allclose(prob, ref_prob, atol=2e-3, rtol=2e-3)
    assert jnp.allclose(y, ref_y, atol=2e-3, rtol=2e-3)
    assert jnp.allclose(jnp.sum(prob, axis=-1), 1.0, atol=1e-3)
    assert jnp.allclose(jnp.sum(y, axis=-1), 1.0, atol=1e-3)

    # Also exercise the hard (straight-through) path: forward value is a one-hot.
    _, _, y_hard = gumbel_softmax_forward(x, w, b, u, temperature=1.0, hard=True)
    jax.block_until_ready(y_hard)
    assert jnp.allclose(jnp.sum(y_hard, axis=-1), 1.0, atol=1e-6)
    assert jnp.allclose(jnp.max(y_hard, axis=-1), 1.0, atol=1e-6)

    print("KERNEL_OK")
</pallas_src>

<mosaic_0001>
module attributes {stable_mosaic.version = 11 : i64} {
  func.func @gumbel_softmax_kernel(%arg0: i32, %arg1: memref<8x32xf32, #tpu.memory_space<vmem>>, %arg2: memref<32x8xf32, #tpu.memory_space<vmem>>, %arg3: memref<1x8xf32, #tpu.memory_space<vmem>>, %arg4: memref<8x8xf32, #tpu.memory_space<vmem>>, %arg5: memref<8x128xf32, #tpu.memory_space<vmem>>) attributes {dimension_semantics = [#tpu.dimension_semantics<parallel>], iteration_bounds = array<i64: 1>, scalar_prefetch = 0 : i64, scratch_operands = 0 : i64, tpu.core_type = #tpu.core_type<tc>, window_params = [{transform_indices = @transform_0, window_bounds = array<i64: 8, 32>}, {pipeline_mode = #tpu.pipeline_mode<synchronous>, transform_indices = @transform_1, window_bounds = array<i64: 32, 8>}, {pipeline_mode = #tpu.pipeline_mode<synchronous>, transform_indices = @transform_2, window_bounds = array<i64: 1, 8>}, {transform_indices = @transform_3, window_bounds = array<i64: 8, 8>}, {transform_indices = @transform_4, window_bounds = array<i64: 8, 128>}]} {
    %c0 = arith.constant 0 : index
    %c0_0 = arith.constant 0 : index
    %0 = vector.load %arg1[%c0, %c0_0] : memref<8x32xf32, #tpu.memory_space<vmem>>, vector<8x32xf32>
    %c0_1 = arith.constant 0 : index
    %c0_2 = arith.constant 0 : index
    %1 = vector.load %arg2[%c0_1, %c0_2] : memref<32x8xf32, #tpu.memory_space<vmem>>, vector<32x8xf32>
    %cst = arith.constant dense<0.000000e+00> : vector<8x8xf32>
    %2 = tpu.matmul %0, %1, %cst {dimension_numbers = #tpu.dot_dimension_numbers<[1], [0], [0], [1], [0, 0, 1, 1], [], []>} : vector<8x32xf32>, vector<32x8xf32>, vector<8x8xf32> -> vector<8x8xf32>
    %c0_3 = arith.constant 0 : index
    %c0_4 = arith.constant 0 : index
    %3 = vector.load %arg3[%c0_3, %c0_4] : memref<1x8xf32, #tpu.memory_space<vmem>>, vector<1x8xf32>
    %4 = vector.broadcast %3 : vector<1x8xf32> to vector<8x8xf32>
    %5 = arith.addf %2, %4 : vector<8x8xf32>
    %cst_5 = arith.constant dense<0xFF800000> : vector<8xf32>
    %6 = vector.multi_reduction <maximumf>, %5, %cst_5 [1] : vector<8x8xf32> to vector<8xf32>
    %7 = vector.shape_cast %6 : vector<8xf32> to vector<8x1xf32>
    %8 = vector.broadcast %7 : vector<8x1xf32> to vector<8x8xf32>
    %9 = arith.subf %5, %8 : vector<8x8xf32>
    %10 = math.exp %9 : vector<8x8xf32>
    %cst_6 = arith.constant dense<0.000000e+00> : vector<8xf32>
    %11 = vector.multi_reduction <add>, %10, %cst_6 [1] : vector<8x8xf32> to vector<8xf32>
    %12 = vector.shape_cast %11 : vector<8xf32> to vector<8x1xf32>
    %13 = vector.broadcast %12 : vector<8x1xf32> to vector<8x8xf32>
    %14 = arith.divf %10, %13 : vector<8x8xf32>
    %c0_7 = arith.constant 0 : index
    %c0_8 = arith.constant 0 : index
    %15 = vector.load %arg4[%c0_7, %c0_8] : memref<8x8xf32, #tpu.memory_space<vmem>>, vector<8x8xf32>
    %cst_9 = arith.constant 9.99999968E-21 : f32
    %16 = vector.broadcast %cst_9 : f32 to vector<8x8xf32>
    %17 = arith.addf %15, %16 : vector<8x8xf32>
    %18 = math.log %17 : vector<8x8xf32>
    %cst_10 = arith.constant 0.000000e+00 : f32
    %19 = vector.broadcast %cst_10 : f32 to vector<8x8xf32>
    %20 = arith.subf %19, %18 : vector<8x8xf32>
    %cst_11 = arith.constant 9.99999968E-21 : f32
    %21 = vector.broadcast %cst_11 : f32 to vector<8x8xf32>
    %22 = arith.addf %20, %21 : vector<8x8xf32>
    %23 = math.log %22 : vector<8x8xf32>
    %cst_12 = arith.constant 0.000000e+00 : f32
    %24 = vector.broadcast %cst_12 : f32 to vector<8x8xf32>
    %25 = arith.subf %24, %23 : vector<8x8xf32>
    %26 = arith.addf %5, %25 : vector<8x8xf32>
    %cst_13 = arith.constant 1.000000e+00 : f32
    %27 = vector.broadcast %cst_13 : f32 to vector<8x8xf32>
    %28 = arith.mulf %26, %27 : vector<8x8xf32>
    %cst_14 = arith.constant dense<0xFF800000> : vector<8xf32>
    %29 = vector.multi_reduction <maximumf>, %28, %cst_14 [1] : vector<8x8xf32> to vector<8xf32>
    %30 = vector.shape_cast %29 : vector<8xf32> to vector<8x1xf32>
    %31 = vector.broadcast %30 : vector<8x1xf32> to vector<8x8xf32>
    %32 = arith.subf %28, %31 : vector<8x8xf32>
    %33 = math.exp %32 : vector<8x8xf32>
    %cst_15 = arith.constant dense<0.000000e+00> : vector<8xf32>
    %34 = vector.multi_reduction <add>, %33, %cst_15 [1] : vector<8x8xf32> to vector<8xf32>
    %35 = vector.shape_cast %34 : vector<8xf32> to vector<8x1xf32>
    %36 = vector.broadcast %35 : vector<8x1xf32> to vector<8x8xf32>
    %37 = arith.divf %33, %36 : vector<8x8xf32>
    %cst_16 = arith.constant 0.000000e+00 : f32
    %38 = vector.broadcast %cst_16 : f32 to vector<8x128xf32>
    %c0_17 = arith.constant 0 : index
    %c0_18 = arith.constant 0 : index
    %39 = vector.load %arg5[%c0_17, %c0_18] : memref<8x128xf32, #tpu.memory_space<vmem>>, vector<8x128xf32>
    tpu.vector_store %arg5[%c0_17, %c0_18], %38 {strides = array<i32>} : memref<8x128xf32, #tpu.memory_space<vmem>>, vector<8x128xf32>,
    %c0_19 = arith.constant 0 : index
    %c0_20 = arith.constant 0 : index
    %40 = vector.load %arg5[%c0_19, %c0_20] : memref<8x128xf32, #tpu.memory_space<vmem>>, vector<8x8xf32>
    tpu.vector_store %arg5[%c0_19, %c0_20], %5 {strides = array<i32>} : memref<8x128xf32, #tpu.memory_space<vmem>>, vector<8x8xf32>,
    %c0_21 = arith.constant 0 : index
    %c8 = arith.constant 8 : index
    %41 = vector.load %arg5[%c0_21, %c8] : memref<8x128xf32, #tpu.memory_space<vmem>>, vector<8x8xf32>
    tpu.vector_store %arg5[%c0_21, %c8], %14 {strides = array<i32>} : memref<8x128xf32, #tpu.memory_space<vmem>>, vector<8x8xf32>,
    %c0_22 = arith.constant 0 : index
    %c16 = arith.constant 16 : index
    %42 = vector.load %arg5[%c0_22, %c16] : memref<8x128xf32, #tpu.memory_space<vmem>>, vector<8x8xf32>
    tpu.vector_store %arg5[%c0_22, %c16], %37 {strides = array<i32>} : memref<8x128xf32, #tpu.memory_space<vmem>>, vector<8x8xf32>,
    return
  }
  func.func @transform_0(%arg0: i32) -> (i32, i32) {
    %c0_i32 = arith.constant 0 : i32
    %c0_i32_0 = arith.constant 0 : i32
    return %arg0, %c0_i32 : i32, i32
  }
  func.func @transform_1(%arg0: i32) -> (i32, i32) {
    %c0_i32 = arith.constant 0 : i32
    %c0_i32_0 = arith.constant 0 : i32
    %c0_i32_1 = arith.constant 0 : i32
    return %c0_i32, %c0_i32_0 : i32, i32
  }
  func.func @transform_2(%arg0: i32) -> (i32, i32) {
    %c0_i32 = arith.constant 0 : i32
    %c0_i32_0 = arith.constant 0 : i32
    %c0_i32_1 = arith.constant 0 : i32
    return %c0_i32, %c0_i32_0 : i32, i32
  }
  func.func @transform_3(%arg0: i32) -> (i32, i32) {
    %c0_i32 = arith.constant 0 : i32
    %c0_i32_0 = arith.constant 0 : i32
    return %arg0, %c0_i32 : i32, i32
  }
  func.func @transform_4(%arg0: i32) -> (i32, i32) {
    %c0_i32 = arith.constant 0 : i32
    %c0_i32_0 = arith.constant 0 : i32
    return %arg0, %c0_i32 : i32, i32
  }
}

</mosaic_0001>

<bundles_post_ra>
// kernel: tpu_custom_call.1
= control target key start
LH: loop header
LB: loop body
LE: loop exit
PB: predicated region body
PF: predicated region fallthrough
CT: control target
= control target key end

     0   :  { %s242_s0 = inlined_call_operand.vmem [shape: f32[8,32], index: 0, kind: input, shape index: {}]   ;;  %s243_s1 = inlined_call_operand.vmem [shape: f32[32,8], index: 1, kind: input, shape index: {}]   ;;  %s244_s2 = inlined_call_operand.vmem [shape: f32[1,8], index: 2, kind: input, shape index: {}]   ;;  %s245_s3 = inlined_call_operand.vmem [shape: f32[8,8], index: 3, kind: input, shape index: {}]   ;;  %s246_s4 = inlined_call_operand.hbm [shape: f32[8,128], index: 4, kind: output, shape index: {}]  }
   0x1   :  { %v22_v0 = vld [vmem:[%s243_s1 + $0x18] sm:$0xff]  ;;  %v21_v1 = vld [vmem:[%s243_s1 + $0x10] sm:$0xff]  ;;  %v20_v2 = vld [vmem:[%s243_s1 + $0x8] sm:$0xff] }
   0x2   :  { %43 = vmatpush.msra.mxu0 %v22_v0 }
   0x3   :  { %9 = vsyncpa [#allocation3], 0  ;;  %v19_v3 = vld [vmem:[%s243_s1] sm:$0xff]  ;;  %vm27_vm0 = vcmask 261120   ;;  %v184_v7 = vmov 0.0   ;;  %vm51_vm1 = vcmask 64512  }
   0x4   :  { %44 = vmatpush.msra.mxu0 %v21_v1  ;;  %v18_v4 = vld [vmem:[%s242_s0] sm:$0xff]  ;;  %110 = vst [vmem:[#allocation2] sm:$0xff] %v184_v7  ;;  %s185_s0 = smov 8   ;;  %vm116_vm10 = vcmask 130112   ;;  %s131_s5 = sshll.u32 %s246_s4, 4  ;;  %vm122_vm11 = vcmask 195712   ;;  %s132_s5 = int_to_ptr.hbm [resolvable:$true] %s131_s5 }
   0x5   :  { %v76_v5 = vld [vmem:[%s245_s3] sm:$0xff]  ;;  %s187_s3 = smov [#allocation2]  }
   0x6   :  { %45 = vmatpush.msra.mxu0 %v20_v2  ;;  %v77_v6 = vadd.f32 1e-20, %v76_v5  ;;  %v145_v13 = vld [vmem:[%s244_s2] ss:$0 sm:$0xff]  ;;  %s186_s2 = smov 16   ;;  %s129_s28 = sshll.u32 %s187_s3, 4  ;;  %s130_s28 = int_to_ptr.vmem [resolvable:$true] %s129_s28 }
   0x8   :  { %46 = vmatpush.msra.mxu0 %v19_v3  ;;  %146 = vlog2.f32 %v77_v6 }
   0x9   :  { %140 = vmatmul.msk.f32.vlgmr.msra.gmra.mxu0 %vm27_vm0, %v18_v4 }
   0xe   :  { %v147_v8 = vpop.eup %146 }
   0xf   :  { %v79_v9 = vmul.f32 0.6931472, %v147_v8 }
  0x11   :  { %v80_v10 = vsub.f32 0.0, %v79_v9 }
  0x13   :  { %v81_v11 = vadd.f32 1e-20, %v80_v10 }
  0x15   :  { %148 = vlog2.f32 %v81_v11 }
  0x1b   :  { %v149_v12 = vpop.eup %148 }
  0x1c   :  { %v83_v14 = vmul.f32 0.6931472, %v149_v12 }
  0x1e   :  { %v84_v18 = vsub.f32 0.0, %v83_v14 }
  0x86   :  { %v48_v15 = vpop.f32.mrf.mxu0 }
  0x87   :  { %v49_v16 = vadd.f32 %v145_v13, %v48_v15 }
  0x89   :  { %v52_v17 = vsel %vm51_vm1, %v49_v16, -inf  ;;  %111 = vst.msk [vmem:[#allocation2] sm:$0xff] %vm51_vm1, %v49_v16  ;;  %v85_v19 = vadd.f32 %v84_v18, %v49_v16 }
  0x8a   :  { %53 = vmax.xlane.f32.xlu0 %v52_v17 }
  0x8b   :  { %v86_v20 = vsel %vm51_vm1, %v85_v19, -inf }
  0x92   :  { %87 = vmax.xlane.f32.xlu0 %v86_v20 }
  0xfd   :  { %v54_v21 = vpop.xlane.xlu0 %53 }
  0xfe   :  { %v55_v22 = vsub.f32 %v49_v16, %v54_v21 }
 0x100   :  { %v56_v23 = vmul.f32 1.442695, %v55_v22 }
 0x102   :  { %150 = vpow2.f32 %v56_v23 }
 0x105   :  { %v88_v24 = vpop.xlane.xlu0 %87 }
 0x106   :  { %v89_v25 = vsub.f32 %v85_v19, %v88_v24 }
 0x108   :  { %v151_v26 = vpop.eup %150  ;;  %v90_v27 = vmul.f32 1.442695, %v89_v25 }
 0x109   :  { %v58_v28 = vsel %vm51_vm1, %v151_v26, 0.0 }
 0x10a   :  { %152 = vpow2.f32 %v90_v27  ;;  %59 = vadd.xlane.f32.xlu1 %v58_v28 }
 0x110   :  { %v153_v29 = vpop.eup %152 }
 0x111   :  { %v92_v30 = vsel %vm51_vm1, %v153_v29, 0.0 }
 0x112   :  { %93 = vadd.xlane.f32.xlu1 %v92_v30 }
 0x17d   :  { %v60_v31 = vpop.xlane.xlu1 %59 }
 0x17e   :  { %154 = vrcp.f32 %v60_v31  ;;  %v72_v36 = vand.u32 2147483648, %v60_v31  ;;  %v70_v38 = vand.u32 2147483647, %v60_v31  ;;  %vm66_vm3 = vweird.f32 %v60_v31 }
 0x180   :  { %v73_v41 = vor.u32 1.1754944e-38, %v72_v36  ;;  %vm71_vm5 = vcmp.eq.f32.partialorder %v70_v38, 8.507059e+37 }
 0x184   :  { %v155_v32 = vpop.eup %154 }
 0x185   :  { %v62_v33 = vmul.f32 %v155_v32, %v60_v31  ;;  %v94_v34 = vpop.xlane.xlu1 %93  ;;  %vm67_vm2 = vweird.f32 %v155_v32 }
 0x186   :  { %156 = vrcp.f32 %v94_v34  ;;  %vm68_vm4 = vmor %vm66_vm3, %vm67_vm2  ;;  %v106_v47 = vand.u32 2147483648, %v94_v34  ;;  %v104_v49 = vand.u32 2147483647, %v94_v34  ;;  %vm100_vm7 = vweird.f32 %v94_v34 }
 0x187   :  { %v63_v35 = vsub.f32 1.0, %v62_v33 }
 0x188   :  { %v107_v51 = vor.u32 1.1754944e-38, %v106_v47  ;;  %vm105_vm9 = vcmp.eq.f32.partialorder %v104_v49, 8.507059e+37 }
 0x189   :  { %v64_v37 = vmul.f32 %v155_v32, %v63_v35 }
 0x18b   :  { %v65_v39 = vadd.f32 %v155_v32, %v64_v37 }
 0x18c   :  { %v157_v40 = vpop.eup %156 }
 0x18d   :  { %v96_v42 = vmul.f32 %v157_v40, %v94_v34  ;;  %v69_v43 = vsel %vm68_vm4, %v155_v32, %v65_v39  ;;  %vm101_vm6 = vweird.f32 %v157_v40 }
 0x18e   :  { %v74_v44 = vsel %vm71_vm5, %v73_v41, %v69_v43  ;;  %vm102_vm8 = vmor %vm100_vm7, %vm101_vm6 }
 0x18f   :  { %v97_v45 = vsub.f32 1.0, %v96_v42  ;;  %v75_v46 = vmul.f32 %v151_v26, %v74_v44 }
 0x191   :  { %v98_v48 = vmul.f32 %v157_v40, %v97_v45  ;;  %113 = vrot.lane.b32.xlu2 %v75_v46, %s185_s0 }
 0x193   :  { %v99_v50 = vadd.f32 %v157_v40, %v98_v48 }
 0x195   :  { %v103_v52 = vsel %vm102_vm8, %v157_v40, %v99_v50 }
 0x196   :  { %v108_v53 = vsel %vm105_vm9, %v107_v51, %v103_v52 }
 0x197   :  { %v109_v54 = vmul.f32 %v153_v29, %v108_v53 }
 0x199   :  { %119 = vrot.lane.b32.xlu2 %v109_v54, %s186_s2 }
 0x1eb   :  { %v114_v55 = vpop.permute.xlu2 %113 }
 0x1ec   :  { %117 = vst.msk [vmem:[#allocation2] sm:$0xff] %vm116_vm10, %v114_v55 }
 0x1f3   :  { %v120_v56 = vpop.permute.xlu2 %119 }
 0x1f4   :  { %123 = vst.msk [vmem:[#allocation2] sm:$0xff] %vm122_vm11, %v120_v56 }
 0x1f5   :  { %134 = dma.vmem_to_hbm [thread:$0]  %s130_s28, 128, %s132_s5, [#allocation3]  }
 0x1f6   :  { %182 = dma.done.wait [#allocation3], 128  }
 0x1f7   :  { %183 = vsyncadd [#allocation3], 4294967168 }
 0x1f8   :  { %139 = vsyncpa [#allocation3], 1 }

</bundles_post_ra>
